<compile_context>
chip_gen: v7x
topology: tpu7x:2x2x1
jax: 0.10.0
libtpu: 0.0.40
codegen_flags: <defaults>
</compile_context>

<pallas_src>
import functools

import jax
import jax.numpy as jnp
from jax.experimental import pallas as pl
from jax.experimental.pallas import tpu as pltpu


LEAKY_SLOPE = 0.01   # nn.LeakyReLU default
BN_EPS = 1e-5        # nn.BatchNorm1d default


def _leaky_relu(x):
    return jnp.where(x > 0, x, LEAKY_SLOPE * x)


def _round_up(x, m):
    return (x + m - 1) // m * m


def ssnet_kernel(xs_ref, w_enc_ref, w_fc1_ref, w_fc2a_ref, b_fc2a_ref,
                 w_fc2b_ref, b_fc2b_ref, out_ref, acc_ref):
    """Grid = (batch_tiles, k_tiles); k (encoder in_features) is the reduction axis.

    xs_ref    : (2, bm, tk)  bf16  stacked (x1, x2) tile
    w_enc_ref : (tk, D)      bf16  encoder-weight K slab (tiled over k)
    w_fc1_ref : (D, D)       f32   grid-invariant (resident)
    w_fc2a_ref: (D, H)       f32   grid-invariant, BatchNorm scale folded in
    b_fc2a_ref: (1, H)       f32   folded BatchNorm bias
    w_fc2b_ref: (1, H)       f32   final Linear(H, 1) weight as a row
    b_fc2b_ref: (1,)         f32   SMEM scalar
    out_ref   : (1, 1, bm)   f32   lane-dense per-tile output row
    acc_ref   : (2, bm, D)   f32   encoder accumulator (VMEM scratch)
    """
    k = pl.program_id(1)
    nk = pl.num_programs(1)
    pair, bm, tk = xs_ref.shape
    d_emb = acc_ref.shape[-1]

    @pl.when(k == 0)
    def _():
        acc_ref[...] = jnp.zeros_like(acc_ref)

    # Siamese pair stacked into one MXU matmul: (2*bm, tk) @ (tk, D), f32 accumulate.
    x = xs_ref[...].reshape(pair * bm, tk)
    acc_ref[...] += jnp.dot(
        x, w_enc_ref[...], preferred_element_type=jnp.float32
    ).reshape(pair, bm, d_emb)

    @pl.when(k == nk - 1)
    def _():
        # Encoder ReLU epilogue; leading-dim split is copy-free regardless of bm.
        f1 = jnp.maximum(acc_ref[0], 0.0)            # (bm, D)
        f2 = jnp.maximum(acc_ref[1], 0.0)            # (bm, D)
        d = jnp.abs(f1 - f2)                         # |f1 - f2| kept in f32

        # fc1: Linear(D, D, bias=False) + LeakyReLU.  Dropout(0.5) = identity (eval).
        h1 = jnp.dot(d, w_fc1_ref[...], preferred_element_type=jnp.float32)
        h1 = _leaky_relu(h1)

        # fc2[0:3]: Linear(D, H, bias=False) -> BatchNorm1d (folded) -> LeakyReLU.
        h2 = jnp.dot(h1, w_fc2a_ref[...], preferred_element_type=jnp.float32)
        h2 = _leaky_relu(h2 + b_fc2a_ref[...])

        # fc2[3]: Linear(H, 1).  N=1 matmul replaced with VPU multiply + lane reduce.
        y = jnp.sum(h2 * w_fc2b_ref[...], axis=-1) + b_fc2b_ref[0]       # (bm,)
        out_ref[...] = y.reshape(1, 1, bm).astype(out_ref.dtype)


@functools.partial(jax.jit, static_argnames=("bm_max", "tk_max"))
def ssnet_forward(x1_nchw, x2_nchw, params, *, bm_max=256, tk_max=2048):
    """x1_nchw, x2_nchw: (B, C, H, W) float32.  Returns (B, 1) similarity logit."""
    B = x1_nchw.shape[0]
    x1_flat = x1_nchw.reshape(B, -1).astype(jnp.float32)
    x2_flat = x2_nchw.reshape(B, -1).astype(jnp.float32)
    F = x1_flat.shape[1]
    D = params["w_enc"].shape[1]
    H = params["w_fc2a"].shape[1]

    # Adaptive tiles.  Small problems collapse to a single grid step per axis so the
    # whole batch is resident and w_enc is streamed from HBM exactly once; large
    # problems get MXU-filling (2*256, 2048) encoder-matmul slabs.  For very large B
    # on v7x the batch axis then has >=2 "parallel" tiles for the two TensorCores.
    bm = min(_round_up(B, 16), _round_up(bm_max, 16))     # bf16 sublane packing
    tk = min(_round_up(F, 128), _round_up(tk_max, 128))   # lane alignment
    Bp = _round_up(B, bm)
    Fp = _round_up(F, tk)
    nb = Bp // bm
    nk = Fp // tk

    def pad2(a, rows, cols):
        return jnp.pad(a, ((0, rows - a.shape[0]), (0, cols - a.shape[1])))

    # Stack the siamese pair -> single encoder matmul; bf16 for MXU/bandwidth.
    xs = jnp.stack([pad2(x1_flat, Bp, Fp), pad2(x2_flat, Bp, Fp)], axis=0)
    xs = xs.astype(jnp.bfloat16)                                         # (2, Bp, Fp)

    w_enc = jnp.pad(params["w_enc"], ((0, Fp - F), (0, 0))).astype(jnp.bfloat16)
    # Head matmuls are tiny -> keep them (and d) in f32 for accuracy.
    w_fc1 = params["w_fc1"].astype(jnp.float32)

    # Fold BatchNorm1d (running stats, eval) into fc2a: scale into columns, one bias.
    scale = params["bn_gamma"] * jax.lax.rsqrt(params["bn_var"] + BN_EPS)   # (1, H)
    w_fc2a = (params["w_fc2a"] * scale).astype(jnp.float32)                 # (D, H)
    b_fc2a = (params["bn_beta"] - params["bn_mean"] * scale).astype(jnp.float32)

    w_fc2b_row = params["w_fc2b"].reshape(1, H).astype(jnp.float32)         # (1, H)
    b_fc2b = params["b_fc2b"].reshape(1).astype(jnp.float32)                # SMEM (1,)

    grid = (nb, nk)

    flops = (2 * (2 * Bp) * Fp * D      # encoder matmul (stacked pair)
             + 2 * Bp * D * D           # fc1
             + 2 * Bp * D * H           # fc2a
             + 2 * Bp * H)              # final mul+reduce
    bytes_accessed = (xs.size * xs.dtype.itemsize
                      + nb * w_enc.size * w_enc.dtype.itemsize   # streamed per batch tile
                      + (w_fc1.size + w_fc2a.size + b_fc2a.size
                         + w_fc2b_row.size + b_fc2b.size) * 4
                      + Bp * 4)

    out = pl.pallas_call(
        ssnet_kernel,
        out_shape=jax.ShapeDtypeStruct((nb, 1, bm), jnp.float32),
        grid_spec=pltpu.PrefetchScalarGridSpec(
            num_scalar_prefetch=0,
            grid=grid,
            in_specs=[
                pl.BlockSpec((2, bm, tk), lambda i, k: (0, i, k)),   # xs (tiled)
                pl.BlockSpec((tk, D), lambda i, k: (k, 0)),          # w_enc (K-tiled)
                pl.BlockSpec((D, D), lambda i, k: (0, 0)),           # w_fc1 (resident)
                pl.BlockSpec((D, H), lambda i, k: (0, 0)),           # w_fc2a (BN folded)
                pl.BlockSpec((1, H), lambda i, k: (0, 0)),           # folded BN bias
                pl.BlockSpec((1, H), lambda i, k: (0, 0)),           # w_fc2b row
                pl.BlockSpec(memory_space=pltpu.MemorySpace.SMEM),   # b_fc2b scalar
            ],
            out_specs=pl.BlockSpec((1, 1, bm), lambda i, k: (i, 0, 0)),
            scratch_shapes=[pltpu.VMEM((2, bm, D), jnp.float32)],
        ),
        compiler_params=pltpu.CompilerParams(
            dimension_semantics=("parallel", "arbitrary"),
            vmem_limit_bytes=64 * 1024 * 1024),
        cost_estimate=pl.CostEstimate(
            flops=flops, transcendentals=0, bytes_accessed=bytes_accessed),
    )(xs, w_enc, w_fc1, w_fc2a, b_fc2a, w_fc2b_row, b_fc2b)

    return out.reshape(Bp, 1)[:B]


def ssnet_reference(x1_nchw, x2_nchw, params):
    """Pure-JAX f32 reference of the same eval-mode forward."""
    B = x1_nchw.shape[0]

    def encode(x):
        return jnp.maximum(x.reshape(B, -1) @ params["w_enc"], 0.0)

    d = jnp.abs(encode(x1_nchw) - encode(x2_nchw))
    h1 = _leaky_relu(d @ params["w_fc1"])
    h2 = h1 @ params["w_fc2a"]
    h2 = (h2 - params["bn_mean"]) * jax.lax.rsqrt(params["bn_var"] + BN_EPS)
    h2 = h2 * params["bn_gamma"] + params["bn_beta"]
    h2 = _leaky_relu(h2)
    return h2 @ params["w_fc2b"] + params["b_fc2b"]


def init_params(key, in_features, embedding_num, hidden):
    """Mirror of the module __init__: Linear weights ~ N(0, 0.01), fresh BatchNorm."""
    k_enc, k1, k2a, k2b = jax.random.split(key, 4)
    return {
        "w_enc":  0.01 * jax.random.normal(k_enc, (in_features, embedding_num), jnp.float32),
        "w_fc1":  0.01 * jax.random.normal(k1, (embedding_num, embedding_num), jnp.float32),
        "w_fc2a": 0.01 * jax.random.normal(k2a, (embedding_num, hidden), jnp.float32),
        "bn_gamma": jnp.ones((1, hidden), jnp.float32),
        "bn_beta":  jnp.zeros((1, hidden), jnp.float32),
        "bn_mean":  jnp.zeros((1, hidden), jnp.float32),
        "bn_var":   jnp.ones((1, hidden), jnp.float32),
        "w_fc2b": 0.01 * jax.random.normal(k2b, (hidden, 1), jnp.float32),
        "b_fc2b": jnp.zeros((1, 1), jnp.float32),
    }


if __name__ == "__main__":
    # Small shapes consistent with the module: B=2 image pairs, 3-channel 16x16
    # inputs, embedding_num=128 (stands in for 256), hidden=256 (stands in for 1024).
    B, C, H, W = 2, 3, 16, 16
    EMBEDDING_NUM = 128
    HIDDEN = 256

    key = jax.random.PRNGKey(0)
    k_x1, k_x2, k_p = jax.random.split(key, 3)

    x1 = jax.random.normal(k_x1, (B, C, H, W), jnp.float32)   # NCHW
    x2 = jax.random.normal(k_x2, (B, C, H, W), jnp.float32)   # NCHW

    params = init_params(k_p, C * H * W, EMBEDDING_NUM, HIDDEN)

    out = ssnet_forward(x1, x2, params)
    jax.block_until_ready(out)

    ref = ssnet_reference(x1, x2, params)
    assert out.shape == (B, 1) and out.dtype == jnp.float32
    # Only the encoder matmul runs in bf16 (f32 accumulation); head stays f32.
    assert jnp.allclose(out, ref, rtol=5e-2, atol=1e-4)
    print("KERNEL_OK")
</pallas_src>

<mosaic_0001>
module attributes {stable_mosaic.version = 11 : i64} {
  func.func @ssnet_kernel(%arg0: i32, %arg1: i32, %arg2: memref<2x16x768xbf16, #tpu.memory_space<vmem>>, %arg3: memref<768x128xbf16, #tpu.memory_space<vmem>>, %arg4: memref<128x128xf32, #tpu.memory_space<vmem>>, %arg5: memref<128x256xf32, #tpu.memory_space<vmem>>, %arg6: memref<1x256xf32, #tpu.memory_space<vmem>>, %arg7: memref<1x256xf32, #tpu.memory_space<vmem>>, %arg8: memref<1xf32, #tpu.memory_space<smem>>, %arg9: memref<1x1x16xf32, #tpu.memory_space<vmem>>, %arg10: memref<2x16x128xf32, #tpu.memory_space<vmem>>) attributes {dimension_semantics = [#tpu.dimension_semantics<parallel>, #tpu.dimension_semantics<arbitrary>], iteration_bounds = array<i64: 1, 1>, scalar_prefetch = 0 : i64, scratch_operands = 1 : i64, tpu.core_type = #tpu.core_type<tc>, window_params = [{transform_indices = @transform_0, window_bounds = array<i64: 2, 16, 768>}, {transform_indices = @transform_1, window_bounds = array<i64: 768, 128>}, {pipeline_mode = #tpu.pipeline_mode<synchronous>, transform_indices = @transform_2, window_bounds = array<i64: 128, 128>}, {pipeline_mode = #tpu.pipeline_mode<synchronous>, transform_indices = @transform_3, window_bounds = array<i64: 128, 256>}, {pipeline_mode = #tpu.pipeline_mode<synchronous>, transform_indices = @transform_4, window_bounds = array<i64: 1, 256>}, {pipeline_mode = #tpu.pipeline_mode<synchronous>, transform_indices = @transform_5, window_bounds = array<i64: 1, 256>}, {transform_indices = @transform_6, window_bounds = array<i64: 1>}, {transform_indices = @transform_7, window_bounds = array<i64: 1, 1, 16>}]} {
    %c0_i32 = arith.constant 0 : i32
    %0 = arith.cmpi eq, %arg1, %c0_i32 : i32
    %1 = arith.extui %0 : i1 to i32
    %c0_i32_0 = arith.constant 0 : i32
    %2 = arith.cmpi ne, %1, %c0_i32_0 : i32
    scf.if %2 {
      %cst_13 = arith.constant 0.000000e+00 : f32
      %14 = vector.broadcast %cst_13 : f32 to vector<2x16x128xf32>
      %c0_14 = arith.constant 0 : index
      %c0_15 = arith.constant 0 : index
      %c0_16 = arith.constant 0 : index
      %15 = vector.load %arg10[%c0_14, %c0_15, %c0_16] : memref<2x16x128xf32, #tpu.memory_space<vmem>>, vector<2x16x128xf32>
      tpu.vector_store %arg10[%c0_14, %c0_15, %c0_16], %14 {strides = array<i32>} : memref<2x16x128xf32, #tpu.memory_space<vmem>>, vector<2x16x128xf32>,
    } else {
    }
    %c0 = arith.constant 0 : index
    %c0_1 = arith.constant 0 : index
    %c0_2 = arith.constant 0 : index
    %3 = vector.load %arg2[%c0, %c0_1, %c0_2] : memref<2x16x768xbf16, #tpu.memory_space<vmem>>, vector<2x16x768xbf16>
    %4 = vector.shape_cast %3 : vector<2x16x768xbf16> to vector<32x768xbf16>
    %c0_3 = arith.constant 0 : index
    %c0_4 = arith.constant 0 : index
    %c0_5 = arith.constant 0 : index
    %5 = vector.load %arg10[%c0_3, %c0_4, %c0_5] : memref<2x16x128xf32, #tpu.memory_space<vmem>>, vector<2x16x128xf32>
    %c0_6 = arith.constant 0 : index
    %c0_7 = arith.constant 0 : index
    %6 = vector.load %arg3[%c0_6, %c0_7] : memref<768x128xbf16, #tpu.memory_space<vmem>>, vector<768x128xbf16>
    %cst = arith.constant dense<0.000000e+00> : vector<32x128xf32>
    %7 = tpu.matmul %4, %6, %cst {dimension_numbers = #tpu.dot_dimension_numbers<[1], [0], [0], [1], [0, 0, 1, 1], [], []>} : vector<32x768xbf16>, vector<768x128xbf16>, vector<32x128xf32> -> vector<32x128xf32>
    %8 = vector.shape_cast %7 : vector<32x128xf32> to vector<2x16x128xf32>
    %9 = arith.addf %5, %8 : vector<2x16x128xf32>
    %c0_8 = arith.constant 0 : index
    %c0_9 = arith.constant 0 : index
    %c0_10 = arith.constant 0 : index
    %10 = vector.load %arg10[%c0_8, %c0_9, %c0_10] : memref<2x16x128xf32, #tpu.memory_space<vmem>>, vector<2x16x128xf32>
    tpu.vector_store %arg10[%c0_8, %c0_9, %c0_10], %9 {strides = array<i32>} : memref<2x16x128xf32, #tpu.memory_space<vmem>>, vector<2x16x128xf32>,
    %c0_i32_11 = arith.constant 0 : i32
    %11 = arith.cmpi eq, %arg1, %c0_i32_11 : i32
    %12 = arith.extui %11 : i1 to i32
    %c0_i32_12 = arith.constant 0 : i32
    %13 = arith.cmpi ne, %12, %c0_i32_12 : i32
    scf.if %13 {
      %c0_13 = arith.constant 0 : index
      %c0_14 = arith.constant 0 : index
      %c0_15 = arith.constant 0 : index
      %14 = vector.load %arg10[%c0_13, %c0_14, %c0_15] : memref<2x16x128xf32, #tpu.memory_space<vmem>>, vector<1x16x128xf32>
      %15 = vector.shape_cast %14 : vector<1x16x128xf32> to vector<16x128xf32>
      %cst_16 = arith.constant 0.000000e+00 : f32
      %16 = vector.broadcast %cst_16 : f32 to vector<16x128xf32>
      %17 = arith.maximumf %15, %16 : vector<16x128xf32>
      %c1 = arith.constant 1 : index
      %c0_17 = arith.constant 0 : index
      %c0_18 = arith.constant 0 : index
      %18 = vector.load %arg10[%c1, %c0_17, %c0_18] : memref<2x16x128xf32, #tpu.memory_space<vmem>>, vector<1x16x128xf32>
      %19 = vector.shape_cast %18 : vector<1x16x128xf32> to vector<16x128xf32>
      %cst_19 = arith.constant 0.000000e+00 : f32
      %20 = vector.broadcast %cst_19 : f32 to vector<16x128xf32>
      %21 = arith.maximumf %19, %20 : vector<16x128xf32>
      %22 = arith.subf %17, %21 : vector<16x128xf32>
      %23 = math.absf %22 : vector<16x128xf32>
      %c0_20 = arith.constant 0 : index
      %c0_21 = arith.constant 0 : index
      %24 = vector.load %arg4[%c0_20, %c0_21] : memref<128x128xf32, #tpu.memory_space<vmem>>, vector<128x128xf32>
      %cst_22 = arith.constant dense<0.000000e+00> : vector<16x128xf32>
      %25 = tpu.matmul %23, %24, %cst_22 {dimension_numbers = #tpu.dot_dimension_numbers<[1], [0], [0], [1], [0, 0, 1, 1], [], []>} : vector<16x128xf32>, vector<128x128xf32>, vector<16x128xf32> -> vector<16x128xf32>
      %cst_23 = arith.constant 0.000000e+00 : f32
      %26 = vector.broadcast %cst_23 : f32 to vector<16x128xf32>
      %27 = arith.cmpf ogt, %25, %26 : vector<16x128xf32>
      %cst_24 = arith.constant 0.00999999977 : f32
      %28 = vector.broadcast %cst_24 : f32 to vector<16x128xf32>
      %29 = arith.mulf %28, %25 : vector<16x128xf32>
      %30 = arith.select %27, %25, %29 : vector<16x128xi1>, vector<16x128xf32>
      %c0_25 = arith.constant 0 : index
      %c0_26 = arith.constant 0 : index
      %31 = vector.load %arg5[%c0_25, %c0_26] : memref<128x256xf32, #tpu.memory_space<vmem>>, vector<128x256xf32>
      %cst_27 = arith.constant dense<0.000000e+00> : vector<16x256xf32>
      %32 = tpu.matmul %30, %31, %cst_27 {dimension_numbers = #tpu.dot_dimension_numbers<[1], [0], [0], [1], [0, 0, 1, 1], [], []>} : vector<16x128xf32>, vector<128x256xf32>, vector<16x256xf32> -> vector<16x256xf32>
      %c0_28 = arith.constant 0 : index
      %c0_29 = arith.constant 0 : index
      %33 = vector.load %arg6[%c0_28, %c0_29] : memref<1x256xf32, #tpu.memory_space<vmem>>, vector<1x256xf32>
      %34 = vector.broadcast %33 : vector<1x256xf32> to vector<16x256xf32>
      %35 = arith.addf %32, %34 : vector<16x256xf32>
      %cst_30 = arith.constant 0.000000e+00 : f32
      %36 = vector.broadcast %cst_30 : f32 to vector<16x256xf32>
      %37 = arith.cmpf ogt, %35, %36 : vector<16x256xf32>
      %cst_31 = arith.constant 0.00999999977 : f32
      %38 = vector.broadcast %cst_31 : f32 to vector<16x256xf32>
      %39 = arith.mulf %38, %35 : vector<16x256xf32>
      %40 = arith.select %37, %35, %39 : vector<16x256xi1>, vector<16x256xf32>
      %c0_32 = arith.constant 0 : index
      %c0_33 = arith.constant 0 : index
      %41 = vector.load %arg7[%c0_32, %c0_33] : memref<1x256xf32, #tpu.memory_space<vmem>>, vector<1x256xf32>
      %42 = vector.broadcast %41 : vector<1x256xf32> to vector<16x256xf32>
      %43 = arith.mulf %40, %42 : vector<16x256xf32>
      %cst_34 = arith.constant dense<0.000000e+00> : vector<16xf32>
      %44 = vector.multi_reduction <add>, %43, %cst_34 [1] : vector<16x256xf32> to vector<16xf32>
      %c0_35 = arith.constant 0 : index
      %45 = memref.load %arg8[%c0_35] : memref<1xf32, #tpu.memory_space<smem>>
      %46 = vector.broadcast %45 : f32 to vector<16xf32>
      %47 = arith.addf %44, %46 : vector<16xf32>
      %48 = vector.shape_cast %47 : vector<16xf32> to vector<1x1x16xf32>
      %c0_36 = arith.constant 0 : index
      %c0_37 = arith.constant 0 : index
      %c0_38 = arith.constant 0 : index
      %49 = vector.load %arg9[%c0_36, %c0_37, %c0_38] : memref<1x1x16xf32, #tpu.memory_space<vmem>>, vector<1x1x16xf32>
      tpu.vector_store %arg9[%c0_36, %c0_37, %c0_38], %48 {strides = array<i32>} : memref<1x1x16xf32, #tpu.memory_space<vmem>>, vector<1x1x16xf32>,
    } else {
    }
    return
  }
  func.func @transform_0(%arg0: i32, %arg1: i32) -> (i32, i32, i32) {
    %c0_i32 = arith.constant 0 : i32
    %c0_i32_0 = arith.constant 0 : i32
    return %c0_i32, %arg0, %arg1 : i32, i32, i32
  }
  func.func @transform_1(%arg0: i32, %arg1: i32) -> (i32, i32) {
    %c0_i32 = arith.constant 0 : i32
    %c0_i32_0 = arith.constant 0 : i32
    return %arg1, %c0_i32 : i32, i32
  }
  func.func @transform_2(%arg0: i32, %arg1: i32) -> (i32, i32) {
    %c0_i32 = arith.constant 0 : i32
    %c0_i32_0 = arith.constant 0 : i32
    %c0_i32_1 = arith.constant 0 : i32
    return %c0_i32, %c0_i32_0 : i32, i32
  }
  func.func @transform_3(%arg0: i32, %arg1: i32) -> (i32, i32) {
    %c0_i32 = arith.constant 0 : i32
    %c0_i32_0 = arith.constant 0 : i32
    %c0_i32_1 = arith.constant 0 : i32
    return %c0_i32, %c0_i32_0 : i32, i32
  }
  func.func @transform_4(%arg0: i32, %arg1: i32) -> (i32, i32) {
    %c0_i32 = arith.constant 0 : i32
    %c0_i32_0 = arith.constant 0 : i32
    %c0_i32_1 = arith.constant 0 : i32
    return %c0_i32, %c0_i32_0 : i32, i32
  }
  func.func @transform_5(%arg0: i32, %arg1: i32) -> (i32, i32) {
    %c0_i32 = arith.constant 0 : i32
    %c0_i32_0 = arith.constant 0 : i32
    %c0_i32_1 = arith.constant 0 : i32
    return %c0_i32, %c0_i32_0 : i32, i32
  }
  func.func @transform_6(%arg0: i32, %arg1: i32) -> i32 {
    %c0_i32 = arith.constant 0 : i32
    %c0_i32_0 = arith.constant 0 : i32
    return %c0_i32 : i32
  }
  func.func @transform_7(%arg0: i32, %arg1: i32) -> (i32, i32, i32) {
    %c0_i32 = arith.constant 0 : i32
    %c0_i32_0 = arith.constant 0 : i32
    %c0_i32_1 = arith.constant 0 : i32
    return %arg0, %c0_i32, %c0_i32_0 : i32, i32, i32
  }
}

</mosaic_0001>

<bundles_post_ra>
// kernel: ssnet_forward.1
= control target key start
LH: loop header
LB: loop body
LE: loop exit
PB: predicated region body
PF: predicated region fallthrough
CT: control target
= control target key end

     0   :  { %13 = vsyncpa [#allocation5], 0  ;;  %s1688_s0 = inlined_call_operand.hbm [shape: bf16[2,16,768], index: 0, kind: input, shape index: {}]   ;;  %s1689_s1 = inlined_call_operand.hbm [shape: bf16[768,128], index: 1, kind: input, shape index: {}]   ;;  %s1690_s2 = inlined_call_operand.hbm [shape: f32[128,128], index: 2, kind: input, shape index: {}]   ;;  %s1691_s3 = inlined_call_operand.hbm [shape: f32[128,256], index: 3, kind: input, shape index: {}]   ;;  %s1692_s4 = inlined_call_operand.hbm [shape: f32[1,256], index: 4, kind: input, shape index: {}]   ;;  %s1693_s5 = inlined_call_operand.hbm [shape: f32[1,256], index: 5, kind: input, shape index: {}]   ;;  %s1694_s6 = inlined_call_operand.<no memory space> [shape: f32[1], index: 6, kind: input, shape index: {}]   ;;  %s1695_s7 = inlined_call_operand.hbm [shape: f32[1,1,16], index: 7, kind: output, shape index: {}]  }
   0x1   :  { %14 = vsyncpa [#allocation8], 0 }
   0x2   :  { %15 = vsyncpa [#allocation11], 0 }
   0x3   :  { %16 = vsyncpa [#allocation14], 0 }
   0x4   :  { %17 = vsyncpa [#allocation6], 0  ;;  %s1545_s24 = smov [#allocation7]   ;;  %s1381_s28 = scalar_lea.hbm %s1689_s1, 6144 }
   0x5   :  { %s35_s25 = sshll.u32 %s1545_s24, 4  ;;  %p1382_p0 = scmp.ne.s32.totalorder %s1689_s1, %s1381_s28  ;;  %s36_s25 = int_to_ptr.vmem [resolvable:$true] %s35_s25 }
   0x6   :  { %p1385_p1 = scmp.lt.u32.totalorder %s1381_s28, %s1689_s1 }
   0x8   :  { %p1387_p2 = pnand %p1385_p1, %p1382_p0 }
   0xa   :  { %1390 = shalt.err (!%p1387_p2)
}
   0xb   :  { %s1391_s10 = scalar_lea.vmem %s36_s25, 6144  ;;  %p1396_p4 = scmp.lt.s32.totalorder %s36_s25, %s36_s25 }
   0xc   :  { %p1392_p3 = scmp.ne.s32.totalorder %s36_s25, %s1391_s10  ;;  %p1397_p5 = scmp.lt.s32.totalorder %s1391_s10, %s1391_s10 }
   0xe   :  { %p1398_p6 = por %p1397_p5, %p1396_p4 }
  0x10   :  { %p1399_p7 = pnand %p1398_p6, %p1392_p3 }
  0x12   :  { %1402 = shalt.err (!%p1399_p7)
}
  0x13   :  { %s1546_s11 = smov 64   ;;  %s1547_s12 = smov 4  }
  0x14   :  { %41 = dma.hbm_to_vmem [thread:$0]  %s1689_s1, 6144, %s36_s25, [#allocation8], %s1546_s11, %s1546_s11, %s1547_s12  }
  0x15   :  { %s1548_s15 = smov [#allocation10]   ;;  %s1403_s19 = scalar_lea.hbm %s1691_s3, 4096 }
  0x16   :  { %s59_s16 = sshll.u32 %s1548_s15, 4  ;;  %p1404_p8 = scmp.ne.s32.totalorder %s1691_s3, %s1403_s19  ;;  %s60_s16 = int_to_ptr.vmem [resolvable:$true] %s59_s16 }
  0x17   :  { %p1407_p9 = scmp.lt.u32.totalorder %s1403_s19, %s1691_s3 }
  0x19   :  { %p1409_p10 = pnand %p1407_p9, %p1404_p8 }
  0x1b   :  { %1412 = shalt.err (!%p1409_p10)
}
  0x1c   :  { %s1413_s24 = scalar_lea.vmem %s60_s16, 4096  ;;  %p1418_p12 = scmp.lt.s32.totalorder %s60_s16, %s60_s16 }
  0x1d   :  { %p1414_p11 = scmp.ne.s32.totalorder %s60_s16, %s1413_s24  ;;  %p1419_p13 = scmp.lt.s32.totalorder %s1413_s24, %s1413_s24 }
  0x1f   :  { %p1420_p0 = por %p1419_p13, %p1418_p12 }
  0x21   :  { %p1421_p1 = pnand %p1420_p0, %p1414_p11 }
  0x23   :  { %1424 = shalt.err (!%p1421_p1)
}
  0x24   :  { %s1549_s1 = smov 256   ;;  %s1550_s25 = smov 16  }
  0x25   :  { %65 = dma.hbm_to_vmem [thread:$0]  %s1691_s3, 4096, %s60_s16, [#allocation11], %s1549_s1, %s1549_s1, %s1550_s25  }
  0x26   :  { %s1551_s28 = smov [#allocation4]   ;;  %s1425_s9 = scalar_lea.hbm %s1688_s0, 1536 }
  0x27   :  { %s23_s29 = sshll.u32 %s1551_s28, 4  ;;  %p1426_p2 = scmp.ne.s32.totalorder %s1688_s0, %s1425_s9  ;;  %s24_s29 = int_to_ptr.vmem [resolvable:$true] %s23_s29 }
  0x28   :  { %p1429_p3 = scmp.lt.u32.totalorder %s1425_s9, %s1688_s0 }
  0x2a   :  { %p1431_p4 = pnand %p1429_p3, %p1426_p2 }
  0x2c   :  { %1434 = shalt.err (!%p1431_p4)
}
  0x2d   :  { %s1435_s14 = scalar_lea.vmem %s24_s29, 1536  ;;  %p1440_p6 = scmp.lt.s32.totalorder %s24_s29, %s24_s29 }
  0x2e   :  { %p1436_p5 = scmp.ne.s32.totalorder %s24_s29, %s1435_s14  ;;  %p1441_p7 = scmp.lt.s32.totalorder %s1435_s14, %s1435_s14 }
  0x30   :  { %p1442_p8 = por %p1441_p7, %p1440_p6 }
  0x32   :  { %p1443_p9 = pnand %p1442_p8, %p1436_p5 }
  0x34   :  { %1446 = shalt.err (!%p1443_p9)
}
  0x35   :  { %s1552_s3 = smov 384   ;;  %s1553_s15 = smov 24  }
  0x36   :  { %29 = dma.hbm_to_vmem [thread:$0]  %s1688_s0, 1536, %s24_s29, [#allocation5], %s1552_s3, %s1552_s3, %s1553_s15  }
  0x37   :  { %s1554_s18 = smov [#allocation9]   ;;  %s1447_s22 = scalar_lea.hbm %s1690_s2, 2048 }
  0x38   :  { %s47_s19 = sshll.u32 %s1554_s18, 4  ;;  %p1448_p10 = scmp.ne.s32.totalorder %s1690_s2, %s1447_s22  ;;  %s48_s19 = int_to_ptr.vmem [resolvable:$true] %s47_s19 }
  0x39   :  { %p1451_p11 = scmp.lt.u32.totalorder %s1447_s22, %s1690_s2 }
  0x3b   :  { %p1453_p12 = pnand %p1451_p11, %p1448_p10 }
  0x3d   :  { %1456 = shalt.err (!%p1453_p12)
}
  0x3e   :  { %s1457_s26 = scalar_lea.vmem %s48_s19, 2048  ;;  %p1462_p0 = scmp.lt.s32.totalorder %s48_s19, %s48_s19 }
  0x3f   :  { %p1458_p13 = scmp.ne.s32.totalorder %s48_s19, %s1457_s26  ;;  %p1463_p1 = scmp.lt.s32.totalorder %s1457_s26, %s1457_s26 }
  0x41   :  { %p1464_p2 = por %p1463_p1, %p1462_p0 }
  0x43   :  { %p1465_p3 = pnand %p1464_p2, %p1458_p13 }
  0x45   :  { %1468 = shalt.err (!%p1465_p3)
}
  0x46   :  { %s1555_s0 = smov 128   ;;  %s1556_s27 = smov 8  }
  0x47   :  { %53 = dma.hbm_to_vmem [thread:$0]  %s1690_s2, 2048, %s48_s19, [#allocation8], %s1555_s0, %s1555_s0, %s1556_s27  }
  0x48   :  { %s1557_s30 = smov [#allocation12]   ;;  %s1558_s9 = smov [#allocation13]  }
  0x49   :  { %s72_s8 = sshll.u32 %s1557_s30, 4  ;;  %s82_s10 = sshll.u32 %s1558_s9, 4  ;;  %s73_s8 = int_to_ptr.vmem [resolvable:$true] %s72_s8  ;;  %s83_s10 = int_to_ptr.vmem [resolvable:$true] %s82_s10 }
  0x4a   :  { %s1469_s13 = scalar_lea.hbm %s1692_s4, 32 }
  0x4b   :  { %p1470_p4 = scmp.ne.s32.totalorder %s1692_s4, %s1469_s13  ;;  %p1473_p5 = scmp.lt.u32.totalorder %s1469_s13, %s1692_s4 }
  0x4d   :  { %p1475_p6 = pnand %p1473_p5, %p1470_p4 }
  0x4f   :  { %1478 = shalt.err (!%p1475_p6)
}
  0x50   :  { %s1479_s2 = scalar_lea.vmem %s73_s8, 32  ;;  %p1484_p8 = scmp.lt.s32.totalorder %s73_s8, %s73_s8 }
  0x51   :  { %p1480_p7 = scmp.ne.s32.totalorder %s73_s8, %s1479_s2  ;;  %p1485_p9 = scmp.lt.s32.totalorder %s1479_s2, %s1479_s2 }
  0x53   :  { %p1486_p10 = por %p1485_p9, %p1484_p8 }
  0x55   :  { %p1487_p11 = pnand %p1486_p10, %p1480_p7 }
  0x57   :  { %1490 = shalt.err (!%p1487_p11)
}
  0x58   :  { %75 = dma.hbm_to_vmem [thread:$0]  %s1692_s4, 32, %s73_s8, [#allocation11]  }
  0x59   :  { %s1491_s21 = scalar_lea.hbm %s1693_s5, 32 }
  0x5a   :  { %p1492_p12 = scmp.ne.s32.totalorder %s1693_s5, %s1491_s21  ;;  %p1495_p13 = scmp.lt.u32.totalorder %s1491_s21, %s1693_s5 }
  0x5c   :  { %p1497_p0 = pnand %p1495_p13, %p1492_p12 }
  0x5e   :  { %1500 = shalt.err (!%p1497_p0)
}
  0x5f   :  { %s1501_s25 = scalar_lea.vmem %s83_s10, 32  ;;  %p1506_p2 = scmp.lt.s32.totalorder %s83_s10, %s83_s10 }
  0x60   :  { %p1502_p1 = scmp.ne.s32.totalorder %s83_s10, %s1501_s25  ;;  %p1507_p3 = scmp.lt.s32.totalorder %s1501_s25, %s1501_s25 }
  0x62   :  { %p1508_p4 = por %p1507_p3, %p1506_p2 }
  0x64   :  { %p1509_p5 = pnand %p1508_p4, %p1502_p1 }
  0x66   :  { %1512 = shalt.err (!%p1509_p5)
}
  0x67   :  { %85 = dma.hbm_to_vmem [thread:$0]  %s1693_s5, 32, %s83_s10, [#allocation14]  }
  0x68   :  { %1535 = dma.done.wait [#allocation5], 1536  }
  0x69   :  { %1536 = vsyncadd [#allocation5], 4294965760 }
  0x6a   :  { %1537 = dma.done.wait [#allocation8], 8192  }
  0x6b   :  { %1538 = vsyncadd [#allocation8], 4294959104 }
  0x6c   :  { %1539 = dma.done.wait [#allocation11], 4128  }
  0x6d   :  { %1540 = vsyncadd [#allocation11], 4294963168 }
  0x6e   :  { %1541 = dma.done.wait [#allocation14], 32  }
  0x6f   :  { %1542 = vsyncadd [#allocation14], 4294967264  ;;  %v1315_v0 = vld [vmem:[#allocation7 + $0x40] sm:$0xff]   ;;  %v1317_v2 = vld [vmem:[#allocation7 + $0x48] sm:$0xff]   ;;  %s1560_s27 = smov [#allocation15]   ;;  %vm1015_vm6 = vcmask 130112  }
  0x70   :  { %v1316_v1 = vld [vmem:[#allocation7] sm:$0xff]   ;;  %1098 = vmatprep.subr.bf16.mxu1 %v1315_v0  ;;  %v1318_v3 = vld [vmem:[#allocation7 + $0x8] sm:$0xff]   ;;  %v1319_v4 = vld [vmem:[#allocation7 + $0x50] sm:$0xff]   ;;  %s1026_s28 = sshll.u32 %s1560_s27, 4  ;;  %vm1018_vm7 = vcmask 122880   ;;  %s1027_s28 = int_to_ptr.vmem [resolvable:$true] %s1026_s28 }
  0x71   :  { %1099 = vmatpush3.bf16.msra.mxu1 %v1316_v1  ;;  %v1320_v5 = vld [vmem:[#allocation7 + $0x10] sm:$0xff]   ;;  %v1321_v6 = vld [vmem:[#allocation7 + $0x58] sm:$0xff]   ;;  %v1323_v8 = vld [vmem:[#allocation7 + $0x60] sm:$0xff]   ;;  %s1513_s29 = scalar_lea.vmem %s1027_s28, 16  ;;  %s1517_s30 = scalar_lea.vmem %s1027_s28, 32 }
  0x72   :  { %1100 = vmatprep.subr.bf16.mxu1 %v1317_v2  ;;  %v1322_v7 = vld [vmem:[#allocation7 + $0x18] sm:$0xff]   ;;  %v1324_v9 = vld [vmem:[#allocation7 + $0x20] sm:$0xff]   ;;  %v1325_v10 = vld [vmem:[#allocation7 + $0x68] sm:$0xff]   ;;  %p1514_p6 = scmp.ne.s32.totalorder %s1027_s28, %s1513_s29  ;;  %p1518_p7 = scmp.lt.s32.totalorder %s1027_s28, %s1027_s28 }
  0x73   :  { %v1326_v11 = vld [vmem:[#allocation7 + $0x28] sm:$0xff]   ;;  %v1333_v12 = vld [vmem:[#allocation4 + $0x4] ss:$24 sps:$4 sm:$0xff]   ;;  %v1327_v14 = vld [vmem:[#allocation7 + $0x70] sm:$0xff]   ;;  %p1519_p8 = scmp.lt.s32.totalorder %s1517_s30, %s1513_s29 }
  0x74   :  { %v1334_v13 = vld [vmem:[#allocation7 + $0x140] sm:$0xff]   ;;  %607 = vmatprep.mubr.bf16.mxu1 %v1333_v12  ;;  %v1328_v16 = vld [vmem:[#allocation7 + $0x30] sm:$0xff]   ;;  %v1338_v17 = vld [vmem:[#allocation7 + $0x148] sm:$0xff]  }
  0x75   :  { %1101 = vmatpush3.bf16.msra.mxu1 %v1318_v3  ;;  %1154 = vmatprep.subr.bf16.mxu0 %v1334_v13  ;;  %v1336_v15 = vld [vmem:[#allocation7 + $0x100] sm:$0xff]   ;;  %v1329_v18 = vld [vmem:[#allocation7 + $0x78] sm:$0xff]   ;;  %v1340_v19 = vld [vmem:[#allocation7 + $0x108] sm:$0xff]   ;;  %p1520_p9 = por %p1519_p8, %p1518_p7 }
  0x76   :  { %1102 = vmatprep.subr.bf16.mxu1 %v1319_v4  ;;  %1155 = vmatpush3.bf16.msra.mxu0 %v1336_v15  ;;  %v1330_v20 = vld [vmem:[#allocation7 + $0x38] sm:$0xff]   ;;  %v1342_v21 = vld [vmem:[#allocation7 + $0x150] sm:$0xff]   ;;  %v1335_v22 = vld [vmem:[#allocation7 + $0xc0] sm:$0xff]  }
  0x77   :  { %1156 = vmatprep.subr.bf16.mxu0 %v1338_v17  ;;  %v1331_v23 = vld [vmem:[#allocation4] ss:$24 sps:$4 sm:$0xff]   ;;  %v1344_v24 = vld [vmem:[#allocation7 + $0x110] sm:$0xff]   ;;  %v1339_v27 = vld [vmem:[#allocation7 + $0xc8] sm:$0xff]   ;;  %p1521_p10 = pnand %p1520_p9, %p1514_p6 }
  0x78   :  { %v1337_v25 = vld [vmem:[#allocation7 + $0x80] sm:$0xff]   ;;  %v1346_v26 = vld [vmem:[#allocation7 + $0x158] sm:$0xff]   ;;  %v1341_v29 = vld [vmem:[#allocation7 + $0x88] sm:$0xff]  }
  0x79   :  { %1103 = vmatpush3.bf16.msra.mxu1 %v1320_v5  ;;  %v1348_v28 = vld [vmem:[#allocation7 + $0x118] sm:$0xff]   ;;  %v1350_v30 = vld [vmem:[#allocation7 + $0x160] sm:$0xff]   ;;  %v1343_v31 = vld [vmem:[#allocation7 + $0xd0] sm:$0xff]  }
  0x7a   :  { %1104 = vmatprep.subr.bf16.mxu1 %v1321_v6  ;;  %1157 = vmatpush3.bf16.msra.mxu0 %v1340_v19  ;;  %v1352_v32 = vld [vmem:[#allocation7 + $0x120] sm:$0xff]   ;;  %v1345_v33 = vld [vmem:[#allocation7 + $0x90] sm:$0xff]   ;;  %v1354_v34 = vld [vmem:[#allocation7 + $0x168] sm:$0xff]  }
  0x7b   :  { %1158 = vmatprep.subr.bf16.mxu0 %v1342_v21  ;;  %v1355_v35 = vld [vmem:[#allocation4 + $0x34] ss:$24 sps:$4 sm:$0xff]   ;;  %v1347_v36 = vld [vmem:[#allocation7 + $0xd8] sm:$0xff]   ;;  %v1359_v38 = vld [vmem:[#allocation4 + $0x30] ss:$24 sps:$4 sm:$0xff]  }
  0x7c   :  { %v1358_v37 = vld [vmem:[#allocation7 + $0x128] sm:$0xff]   ;;  %v1349_v39 = vld [vmem:[#allocation7 + $0x98] sm:$0xff]   ;;  %v1361_v40 = vld [vmem:[#allocation7 + $0x170] sm:$0xff]  }
  0x7d   :  { %1105 = vmatpush3.bf16.msra.mxu1 %v1322_v7  ;;  %v1351_v41 = vld [vmem:[#allocation7 + $0xe0] sm:$0xff]   ;;  %v1363_v42 = vld [vmem:[#allocation7 + $0x130] sm:$0xff]   ;;  %v1365_v44 = vld [vmem:[#allocation7 + $0x178] sm:$0xff]  }
  0x7e   :  { %1106 = vmatprep.subr.bf16.mxu1 %v1323_v8  ;;  %1159 = vmatpush3.bf16.msra.mxu0 %v1344_v24  ;;  %v1353_v43 = vld [vmem:[#allocation7 + $0xa0] sm:$0xff]   ;;  %v1357_v45 = vld [vmem:[#allocation7 + $0xe8] sm:$0xff]   ;;  %v1367_v46 = vld [vmem:[#allocation7 + $0x138] sm:$0xff]  }
  0x7f   :  { %1160 = vmatprep.subr.bf16.mxu0 %v1346_v26  ;;  %v1360_v47 = vld [vmem:[#allocation7 + $0xa8] sm:$0xff]   ;;  %v1362_v50 = vld [vmem:[#allocation7 + $0xf0] sm:$0xff]   ;;  %v1375_v52 = vld [vmem:[#allocation4 + $0x44] ss:$24 sps:$4 sm:$0xff]  }
  0x80   :  { %v1369_v48 = vld [vmem:[#allocation4 + $0x10] ss:$24 sps:$4 sm:$0xff]   ;;  %v1371_v49 = vld [vmem:[#allocation4 + $0x14] ss:$24 sps:$4 sm:$0xff]   ;;  %v1366_v54 = vld [vmem:[#allocation7 + $0xf8] sm:$0xff]  }
  0x81   :  { %1107 = vmatpush3.bf16.msra.mxu1 %v1324_v9  ;;  %705 = vmatprep.mubr.bf16.mxu0 %v1371_v49  ;;  %v1374_v51 = vld [vmem:[#allocation4 + $0xc] ss:$24 sps:$4 sm:$0xff]   ;;  %v1364_v53 = vld [vmem:[#allocation7 + $0xb0] sm:$0xff]   ;;  %v1379_v55 = vld [vmem:[#allocation4 + $0x40] ss:$24 sps:$4 sm:$0xff]  }
  0x82   :  { %1108 = vmatprep.subr.bf16.mxu1 %v1325_v10  ;;  %1161 = vmatpush3.bf16.msra.mxu0 %v1348_v28  ;;  %v1368_v56 = vld [vmem:[#allocation7 + $0xb8] sm:$0xff]   ;;  %v1372_v57 = vld [vmem:[#allocation4 + $0x8] ss:$24 sps:$4 sm:$0xff]   ;;  %v748_v62 = vld [vmem:[#allocation9 + $0x10] sm:$0xff] }
  0x83   :  { %1162 = vmatprep.subr.bf16.mxu0 %v1350_v30  ;;  %v1377_v58 = vld [vmem:[#allocation4 + $0x3c] ss:$24 sps:$4 sm:$0xff]   ;;  %v1380_v59 = vld [vmem:[#allocation4 + $0x38] ss:$24 sps:$4 sm:$0xff]   ;;  %v746_v60 = vld [vmem:[#allocation9] sm:$0xff] }
  0x84   :  { %v747_v61 = vld [vmem:[#allocation9 + $0x8] sm:$0xff]  ;;  %v749_v0 = vld [vmem:[#allocation9 + $0x18] sm:$0xff]  ;;  %v750_v2 = vld [vmem:[#allocation9 + $0x20] sm:$0xff] }
  0x85   :  { %1109 = vmatpush3.bf16.msra.mxu1 %v1326_v11  ;;  %v1235_v63 = vpack.c.bf16 %v747_v61, %v746_v60  ;;  %v1239_v1 = vpack.c.bf16 %v749_v0, %v748_v62  ;;  %v751_v3 = vld [vmem:[#allocation9 + $0x28] sm:$0xff]  ;;  %v752_v5 = vld [vmem:[#allocation9 + $0x30] sm:$0xff]  ;;  %v753_v6 = vld [vmem:[#allocation9 + $0x38] sm:$0xff] }
  0x86   :  { %1110 = vmatprep.subr.bf16.mxu1 %v1327_v14  ;;  %1163 = vmatpush3.bf16.msra.mxu0 %v1352_v32  ;;  %v1243_v4 = vpack.c.bf16 %v751_v3, %v750_v2  ;;  %v1247_v7 = vpack.c.bf16 %v753_v6, %v752_v5  ;;  %v754_v8 = vld [vmem:[#allocation9 + $0x40] sm:$0xff]  ;;  %v755_v9 = vld [vmem:[#allocation9 + $0x48] sm:$0xff]  ;;  %v756_v11 = vld [vmem:[#allocation9 + $0x50] sm:$0xff] }
  0x87   :  { %1164 = vmatprep.subr.bf16.mxu0 %v1354_v34  ;;  %v1251_v10 = vpack.c.bf16 %v755_v9, %v754_v8  ;;  %v757_v12 = vld [vmem:[#allocation9 + $0x58] sm:$0xff]  ;;  %v758_v14 = vld [vmem:[#allocation9 + $0x60] sm:$0xff]  ;;  %v759_v15 = vld [vmem:[#allocation9 + $0x68] sm:$0xff] }
  0x88   :  { %v1255_v13 = vpack.c.bf16 %v757_v12, %v756_v11  ;;  %v760_v17 = vld [vmem:[#allocation9 + $0x70] sm:$0xff]  ;;  %v846_v21 = vld [vmem:[#allocation10 + $0x18] sm:$0xff]  ;;  %v864_v49 = vld [vmem:[#allocation10 + $0xa8] sm:$0xff] }
  0x89   :  { %1111 = vmatpush3.bf16.msra.mxu1 %v1328_v16  ;;  %v1259_v16 = vpack.c.bf16 %v759_v15, %v758_v14  ;;  %v845_v24 = vld [vmem:[#allocation10 + $0x10] sm:$0xff]  ;;  %v850_v26 = vld [vmem:[#allocation10 + $0x38] sm:$0xff] }
  0x8a   :  { %1112 = vmatprep.subr.bf16.mxu1 %v1329_v18  ;;  %1165 = vmatpush3.bf16.msra.mxu0 %v1358_v37  ;;  %v761_v18 = vld [vmem:[#allocation9 + $0x78] sm:$0xff]  ;;  %v849_v30 = vld [vmem:[#allocation10 + $0x30] sm:$0xff]  ;;  %v856_v37 = vld [vmem:[#allocation10 + $0x68] sm:$0xff] }
  0x8b   :  { %1166 = vmatprep.subr.bf16.mxu0 %v1361_v40  ;;  %v1263_v19 = vpack.c.bf16 %v761_v18, %v760_v17  ;;  %v854_v32 = vld [vmem:[#allocation10 + $0x58] sm:$0xff]  ;;  %v869_v60 = vld [vmem:[#allocation10 + $0xd0] sm:$0xff] }
  0x8d   :  { %1113 = vmatpush3.bf16.msra.mxu1 %v1330_v20  ;;  %v844_v20 = vld [vmem:[#allocation10 + $0x8] sm:$0xff] }
  0x8e   :  { %1126 = vmatprep.subr.bf16.mxu1 %v1335_v22  ;;  %1167 = vmatpush3.bf16.msra.mxu0 %v1363_v42  ;;  %v843_v22 = vld [vmem:[#allocation10] sm:$0xff]  ;;  %v857_v42 = vld [vmem:[#allocation10 + $0x70] sm:$0xff] }
  0x8f   :  { %1168 = vmatprep.subr.bf16.mxu0 %v1365_v44  ;;  %v862_v44 = vld [vmem:[#allocation10 + $0x98] sm:$0xff] }
  0x90   :  { %608 = vmatmul.mubr.bf16.vlgmr.msra.gmra.mrb[0].mxu1 %v1331_v23  ;;  %v1267_v23 = vpack.c.bf16 %v846_v21, %v844_v20 }
  0x91   :  { %1127 = vmatpush3.bf16.msra.mxu1 %v1337_v25  ;;  %615 = vmatprep.mubr.bf16.mxu1 %v1355_v35  ;;  %v848_v25 = vld [vmem:[#allocation10 + $0x28] sm:$0xff]  ;;  %v851_v35 = vld [vmem:[#allocation10 + $0x40] sm:$0xff] }
  0x92   :  { %1128 = vmatprep.subr.bf16.mxu1 %v1339_v27  ;;  %1169 = vmatpush3.bf16.msra.mxu0 %v1367_v46  ;;  %v1269_v27 = vpack.c.bf16 %v845_v24, %v843_v22  ;;  %v1271_v28 = vpack.c.bf16 %v850_v26, %v848_v25 }
  0x93   :  { %1268 = vmatprep.subr.bf16.mxu0 %v1267_v23 }
  0x95   :  { %1129 = vmatpush3.bf16.msra.mxu1 %v1341_v29  ;;  %706 = vmatmul.mubr.bf16.vlgmr.msra.gmra.mrb[0].mxu0 %v1369_v48  ;;  %v847_v29 = vld [vmem:[#allocation10 + $0x20] sm:$0xff]  ;;  %v861_v48 = vld [vmem:[#allocation10 + $0x90] sm:$0xff] }
  0x96   :  { %1130 = vmatprep.subr.bf16.mxu1 %v1343_v31  ;;  %713 = vmatprep.mubr.bf16.mxu0 %v1375_v52  ;;  %v852_v31 = vld [vmem:[#allocation10 + $0x48] sm:$0xff] }
  0x97   :  { %1270 = vmatpush1.bf16.msra.mxu0 %v1269_v27  ;;  %v1275_v34 = vpack.c.bf16 %v854_v32, %v852_v31 }
  0x98   :  { %616 = vmatmul.mubr.bf16.gmra.mrb[4].mxu1 %v1359_v38  ;;  %1272 = vmatprep.subr.bf16.mxu0 %v1271_v28  ;;  %v858_v38 = vld [vmem:[#allocation10 + $0x78] sm:$0xff] }
  0x99   :  { %1131 = vmatpush3.bf16.msra.mxu1 %v1345_v33  ;;  %656 = vmatprep.mubr.bf16.mxu1 %v1374_v51  ;;  %v1273_v33 = vpack.c.bf16 %v849_v30, %v847_v29  ;;  %v1279_v40 = vpack.c.bf16 %v858_v38, %v856_v37 }
  0x9a   :  { %1132 = vmatprep.subr.bf16.mxu1 %v1347_v36  ;;  %v853_v36 = vld [vmem:[#allocation10 + $0x50] sm:$0xff] }
  0x9b   :  { %1274 = vmatpush1.bf16.msra.mxu0 %v1273_v33 }
  0x9c   :  { %1276 = vmatprep.subr.bf16.mxu0 %v1275_v34 }
  0x9d   :  { %1133 = vmatpush3.bf16.msra.mxu1 %v1349_v39  ;;  %714 = vmatmul.mubr.bf16.gmra.mrb[4].mxu0 %v1379_v55  ;;  %v1277_v39 = vpack.c.bf16 %v853_v36, %v851_v35  ;;  %v868_v55 = vld [vmem:[#allocation10 + $0xc8] sm:$0xff] }
  0x9e   :  { %1134 = vmatprep.subr.bf16.mxu1 %v1351_v41  ;;  %v855_v41 = vld [vmem:[#allocation10 + $0x60] sm:$0xff] }
  0x9f   :  { %1278 = vmatpush1.bf16.msra.mxu0 %v1277_v39 }
  0xa0   :  { %1280 = vmatprep.subr.bf16.mxu0 %v1279_v40 }
  0xa1   :  { %1135 = vmatpush3.bf16.msra.mxu1 %v1353_v43  ;;  %v860_v43 = vld [vmem:[#allocation10 + $0x88] sm:$0xff] }
  0xa2   :  { %1136 = vmatprep.subr.bf16.mxu1 %v1357_v45  ;;  %v1281_v45 = vpack.c.bf16 %v857_v42, %v855_v41  ;;  %v1283_v46 = vpack.c.bf16 %v862_v44, %v860_v43 }
  0xa4   :  { %1282 = vmatpush1.bf16.msra.mxu0 %v1281_v45 }
  0xa5   :  { %1137 = vmatpush3.bf16.msra.mxu1 %v1360_v47  ;;  %v859_v47 = vld [vmem:[#allocation10 + $0x80] sm:$0xff]  ;;  %1284 = vmatprep.subr.bf16.mxu0 %v1283_v46 }
  0xa6   :  { %1138 = vmatprep.subr.bf16.mxu1 %v1362_v50  ;;  %v866_v50 = vld [vmem:[#allocation10 + $0xb8] sm:$0xff]  ;;  %v1285_v51 = vpack.c.bf16 %v861_v48, %v859_v47 }
  0xa7   :  { %v1287_v52 = vpack.c.bf16 %v866_v50, %v864_v49  ;;  %v872_v50 = vld [vmem:[#allocation10 + $0xe8] sm:$0xff] }
  0xa8   :  { %1286 = vmatpush1.bf16.msra.mxu0 %v1285_v51  ;;  %v874_v51 = vld [vmem:[#allocation10 + $0xf8] sm:$0xff] }
  0xa9   :  { %1139 = vmatpush3.bf16.msra.mxu1 %v1364_v53  ;;  %v863_v53 = vld [vmem:[#allocation10 + $0xa0] sm:$0xff]  ;;  %1288 = vmatprep.subr.bf16.mxu0 %v1287_v52  ;;  %v1295_v52 = vpack.c.bf16 %v874_v51, %v872_v50 }
  0xaa   :  { %1140 = vmatprep.subr.bf16.mxu1 %v1366_v54  ;;  %v865_v54 = vld [vmem:[#allocation10 + $0xb0] sm:$0xff] }
  0xad   :  { %1141 = vmatpush3.bf16.msra.mxu1 %v1368_v56  ;;  %v870_v56 = vld [vmem:[#allocation10 + $0xd8] sm:$0xff] }
  0xae   :  { %1236 = vmatprep.subr.bf16.mxu1 %v1235_v63 }
  0xb0   :  { %657 = vmatmul.mubr.bf16.vlgmr.msra.gmra.mrb[8].mxu1 %v1372_v57  ;;  %v1289_v57 = vpack.c.bf16 %v865_v54, %v863_v53  ;;  %v871_v53 = vld [vmem:[#allocation10 + $0xe0] sm:$0xff]  ;;  %v873_v54 = vld [vmem:[#allocation10 + $0xf0] sm:$0xff] }
  0xb1   :  { %664 = vmatprep.mubr.bf16.mxu1 %v1377_v58  ;;  %1238 = vmatpush3.bf16.msra.mxu1 %v1235_v63  ;;  %v1291_v58 = vpack.c.bf16 %v870_v56, %v868_v55  ;;  %v1297_v55 = vpack.c.bf16 %v873_v54, %v871_v53  ;;  %v1559_v56 = vmov 0.0  }
  0xb2   :  { %1240 = vmatprep.subr.bf16.mxu1 %v1239_v1  ;;  %1290 = vmatpush1.bf16.msra.mxu0 %v1289_v57 }
  0xb3   :  { %1292 = vmatprep.subr.bf16.mxu0 %v1291_v58  ;;  %951 = vmatprep.mubr.f32.mxu0 %v1559_v56 }
  0xb5   :  { %1242 = vmatpush3.bf16.msra.mxu1 %v1239_v1 }
  0xb6   :  { %1244 = vmatprep.subr.bf16.mxu1 %v1243_v4 }
  0xb8   :  { %665 = vmatmul.mubr.bf16.gmra.mrb[12].mxu1 %v1380_v59  ;;  %v867_v59 = vld [vmem:[#allocation10 + $0xc0] sm:$0xff] }
  0xb9   :  { %1246 = vmatpush3.bf16.msra.mxu1 %v1243_v4  ;;  %v1293_v61 = vpack.c.bf16 %v869_v60, %v867_v59 }
  0xba   :  { %1248 = vmatprep.subr.bf16.mxu1 %v1247_v7 }
  0xbb   :  { %1294 = vmatpush1.bf16.msra.mxu0 %v1293_v61 }
  0xbc   :  { %1296 = vmatprep.subr.bf16.mxu0 %v1295_v52 }
  0xbd   :  { %1250 = vmatpush3.bf16.msra.mxu1 %v1247_v7 }
  0xbe   :  { %1252 = vmatprep.subr.bf16.mxu1 %v1251_v10 }
  0xbf   :  { %1298 = vmatpush1.bf16.msra.mxu0 %v1297_v55 }
  0xc1   :  { %1254 = vmatpush3.bf16.msra.mxu1 %v1251_v10 }
  0xc2   :  { %1256 = vmatprep.subr.bf16.mxu1 %v1255_v13 }
  0xc5   :  { %1258 = vmatpush3.bf16.msra.mxu1 %v1255_v13 }
  0xc6   :  { %1260 = vmatprep.subr.bf16.mxu1 %v1259_v16 }
  0xc9   :  { %1262 = vmatpush3.bf16.msra.mxu1 %v1259_v16 }
  0xca   :  { %1264 = vmatprep.subr.bf16.mxu1 %v1263_v19 }
  0xcd   :  { %1266 = vmatpush3.bf16.msra.mxu1 %v1263_v19 }
 0x163   :  { %v1114_v62 = vpop.f32.mrb[0].mxu1 }
 0x164   :  { %v1115_v63 = vpop.f32.mrb[1].mxu1 }
 0x165   :  { %v1116_v0 = vadd.f32 %v1115_v63, %v1114_v62  ;;  %v1117_v1 = vpop.f32.mrb[2].mxu1  ;;  %v877_v63 = vlaneseq }
 0x166   :  { %v1118_v2 = vpop.f32.mrb[3].mxu1 }
 0x167   :  { %v1119_v3 = vadd.f32 %v1118_v2, %v1117_v1  ;;  %v875_v2 = vld [vmem:[#allocation12] sm:$0x3] }
 0x168   :  { %v1170_v10 = vpop.f32.mrb[0].mxu0 }
 0x169   :  { %v1171_v11 = vpop.f32.mrb[1].mxu0 }
 0x16a   :  { %v1172_v12 = vadd.f32 %v1171_v11, %v1170_v10  ;;  %v1173_v13 = vpop.f32.mrb[2].mxu0 }
 0x16b   :  { %v1120_v4 = vpop.f32.mrb[4].mxu1  ;;  %v1174_v14 = vpop.f32.mrb[3].mxu0 }
 0x16c   :  { %v1121_v5 = vpop.f32.mrb[5].mxu1  ;;  %v1175_v15 = vadd.f32 %v1174_v14, %v1173_v13 }
 0x16d   :  { %v1122_v6 = vadd.f32 %v1121_v5, %v1120_v4  ;;  %v1123_v7 = vpop.f32.mrb[6].mxu1 }
 0x16e   :  { %v1124_v8 = vpop.f32.mrb[7].mxu1 }
 0x16f   :  { %v1125_v9 = vadd.f32 %v1124_v8, %v1123_v7 }
 0x170   :  { %v1176_v16 = vpop.f32.mrb[4].mxu0 }
 0x171   :  { %v1177_v17 = vpop.f32.mrb[5].mxu0 }
 0x172   :  { %v1178_v18 = vadd.f32 %v1177_v17, %v1176_v16  ;;  %v1179_v19 = vpop.f32.mrb[6].mxu0 }
 0x173   :  { %v1180_v20 = vpop.f32.mrb[7].mxu0 }
 0x174   :  { %v1181_v22 = vadd.f32 %v1180_v20, %v1179_v19 }
 0x183   :  { %v1142_v21 = vpop.f32.mrb[8].mxu1 }
 0x184   :  { %v1143_v23 = vpop.f32.mrb[9].mxu1 }
 0x185   :  { %v1144_v24 = vadd.f32 %v1143_v23, %v1142_v21  ;;  %v1145_v25 = vpop.f32.mrb[10].mxu1 }
 0x186   :  { %v1146_v26 = vpop.f32.mrb[11].mxu1 }
 0x187   :  { %v659_v27 = vadd.f32 %v1144_v24, %v1116_v0  ;;  %v1147_v28 = vadd.f32 %v1146_v26, %v1145_v25  ;;  %v878_v0 = vshrl.u32 %v877_v63, 7 }
 0x189   :  { %v708_v29 = vadd.f32 %v1172_v12, %v659_v27  ;;  %v662_v30 = vadd.f32 %v1147_v28, %v1119_v3  ;;  %v879_v1 = vsub.s32 0, %v878_v0  ;;  %v883_v3 = vsub.s32 1, %v878_v0 }
 0x18b   :  { %v711_v31 = vadd.f32 %v1175_v15, %v662_v30  ;;  %v1148_v32 = vpop.f32.mrb[12].mxu1  ;;  %v735_v41 = vmax.f32 %v708_v29, 0.0  ;;  %v880_v4 = vrot.slane %v875_v2, %v879_v1  ;;  %v884_v5 = vrot.slane %v875_v2, %v883_v3 }
 0x18c   :  { %v1149_v33 = vpop.f32.mrb[13].mxu1 }
 0x18d   :  { %v1150_v34 = vadd.f32 %v1149_v33, %v1148_v32  ;;  %v1151_v35 = vpop.f32.mrb[14].mxu1  ;;  %v736_v44 = vmax.f32 %v711_v31, 0.0  ;;  %v1005_v31 = vand.u32 127, %v877_v63  ;;  %v999_v33 = vstv %s1694_s6 }
 0x18e   :  { %v1152_v36 = vpop.f32.mrb[15].mxu1 }
 0x18f   :  { %v667_v37 = vadd.f32 %v1150_v34, %v1122_v6  ;;  %v1153_v38 = vadd.f32 %v1152_v36, %v1151_v35  ;;  %v976_v6 = vld [vmem:[#allocation13] sm:$0x3]  ;;  %v1010_v32 = vadd.s32 4294967288, %v1005_v31  ;;  %v1008_v35 = vsub.s32 %v1005_v31, %v878_v0 }
 0x190   :  { %v981_v11 = vrot.slane %v976_v6, %v879_v1  ;;  %v985_v13 = vrot.slane %v976_v6, %v883_v3 }
 0x191   :  { %v716_v39 = vadd.f32 %v1178_v18, %v667_v37  ;;  %v670_v40 = vadd.f32 %v1153_v38, %v1125_v9  ;;  %v1013_v37 = vsub.s32 %v1010_v32, %v878_v0 }
 0x193   :  { %v740_v42 = vmax.f32 %v716_v39, 0.0  ;;  %v719_v43 = vadd.f32 %v1181_v22, %v670_v40 }
 0x195   :  { %v741_v45 = vmax.f32 %v719_v43, 0.0  ;;  %v742_v46 = vsub.f32 %v735_v41, %v740_v42 }
 0x197   :  { %v743_v47 = vsub.f32 %v736_v44, %v741_v45  ;;  %v744_v48 = vand.u32 2147483647, %v742_v46 }
 0x199   :  { %v745_v49 = vand.u32 2147483647, %v743_v47  ;;  %1232 = vmatprep.mubr.f32.mxu1 %v744_v48 }
 0x19b   :  { %1233 = vmatmul.mubr.f32.vlgmr.msra.gmra.mrb[16].mxu1 %v745_v49 }
 0x26e   :  { %v1234_v57 = vpop.f32.mrb[16].mxu1 }
 0x26f   :  { %v828_v58 = vpop.f32.mrb[17].mxu1  ;;  %v840_v60 = vmul.f32 0.01, %v1234_v57  ;;  %vm838_vm1 = vcmp.gt.f32.partialorder %v1234_v57, 0.0 }
 0x270   :  { %vm837_vm0 = vcmp.gt.f32.partialorder %v828_v58, 0.0  ;;  %v839_v59 = vmul.f32 0.01, %v828_v58 }
 0x271   :  { %v842_v62 = vsel %vm838_vm1, %v1234_v57, %v840_v60 }
 0x272   :  { %v841_v61 = vsel %vm837_vm0, %v828_v58, %v839_v59 }
 0x273   :  { %952 = vmatmul.mubr.f32.vlgmr.msra.gmra.mrb[8].mxu0 %v841_v61 }
 0x274   :  { %957 = vmatprep.mubr.f32.mxu0 %v1559_v56 }
 0x277   :  { %958 = vmatmul.mubr.f32.gmra.mrb[10].mxu0 %v842_v62 }
 0x346   :  { %v953_v7 = vpop.f32.mrb[8].mxu0 }
 0x347   :  { %v954_v8 = vadd.f32 %v953_v7, %v880_v4  ;;  %v955_v9 = vpop.f32.mrb[9].mxu0 }
 0x348   :  { %v956_v10 = vadd.f32 %v955_v9, %v884_v5 }
 0x349   :  { %vm964_vm2 = vcmp.gt.f32.partialorder %v954_v8, 0.0  ;;  %v968_v12 = vmul.f32 0.01, %v954_v8 }
 0x34a   :  { %vm965_vm3 = vcmp.gt.f32.partialorder %v956_v10, 0.0  ;;  %v969_v14 = vmul.f32 0.01, %v956_v10  ;;  %v959_v15 = vpop.f32.mrb[10].mxu0 }
 0x34b   :  { %v960_v16 = vadd.f32 %v959_v15, %v880_v4  ;;  %v961_v17 = vpop.f32.mrb[11].mxu0  ;;  %v972_v18 = vsel %vm964_vm2, %v954_v8, %v968_v12 }
 0x34c   :  { %v962_v19 = vadd.f32 %v961_v17, %v884_v5  ;;  %v973_v20 = vsel %vm965_vm3, %v956_v10, %v969_v14  ;;  %v988_v21 = vmul.f32 %v981_v11, %v972_v18 }
 0x34d   :  { %vm966_vm4 = vcmp.gt.f32.partialorder %v960_v16, 0.0  ;;  %v970_v22 = vmul.f32 0.01, %v960_v16  ;;  %v989_v23 = vmul.f32 %v985_v13, %v973_v20 }
 0x34e   :  { %vm967_vm5 = vcmp.gt.f32.partialorder %v962_v19, 0.0  ;;  %v971_v24 = vmul.f32 0.01, %v962_v19 }
 0x34f   :  { %v992_v25 = vadd.f32 %v989_v23, %v988_v21  ;;  %v974_v26 = vsel %vm966_vm4, %v960_v16, %v970_v22 }
 0x350   :  { %v975_v27 = vsel %vm967_vm5, %v962_v19, %v971_v24  ;;  %v990_v28 = vmul.f32 %v981_v11, %v974_v26 }
 0x351   :  { %993 = vadd.xlane.f32.xlu0 %v992_v25  ;;  %v991_v29 = vmul.f32 %v985_v13, %v975_v27 }
 0x353   :  { %v995_v30 = vadd.f32 %v991_v29, %v990_v28 }
 0x355   :  { %996 = vadd.xlane.f32.xlu0 %v995_v30 }
 0x3de   :  { %v994_v34 = vpop.xlane.xlu0 %993 }
 0x3df   :  { %v1000_v36 = vadd.f32 %v999_v33, %v994_v34 }
 0x3e1   :  { %v1009_v40 = vrot.slane %v1000_v36, %v1008_v35 }
 0x3e2   :  { %v997_v38 = vpop.xlane.xlu0 %996 }
 0x3e3   :  { %v1001_v39 = vadd.f32 %v999_v33, %v997_v38 }
 0x3e5   :  { %v1014_v41 = vrot.slane %v1001_v39, %v1013_v37 }
 0x3e7   :  { %v1016_v42 = vsel %vm1015_vm6, %v1014_v41, %v1009_v40 }
 0x3e8   :  { %1019 = vst.msk [vmem:[#allocation15] sm:$0x1] %vm1018_vm7, %v1016_v42 }
 0x3e9   :  { %1524 = shalt.err (!%p1521_p10)
}
 0x3ea   :  { %s1525_s9 = scalar_lea.hbm %s1695_s7, 16 }
 0x3eb   :  { %p1526_p11 = scmp.ne.s32.totalorder %s1695_s7, %s1525_s9  ;;  %p1529_p12 = scmp.lt.u32.totalorder %s1525_s9, %s1695_s7 }
 0x3ed   :  { %p1531_p13 = pnand %p1529_p12, %p1526_p11 }
 0x3ef   :  { %1534 = shalt.err (!%p1531_p13)
}
 0x3f0   :  { %1029 = dma.vmem_to_hbm [thread:$0]  %s1027_s28, 16, %s1695_s7, [#allocation6]  }
 0x3f1   :  { %1543 = dma.done.wait [#allocation6], 16  }
 0x3f2   :  { %1544 = vsyncadd [#allocation6], 4294967280 }
 0x3f3   :  { %1033 = vsyncpa [#allocation5], 1 }
 0x3f4   :  { %1034 = vsyncpa [#allocation8], 1 }
 0x3f5   :  { %1035 = vsyncpa [#allocation11], 1 }
 0x3f6   :  { %1036 = vsyncpa [#allocation14], 1 }
 0x3f7   :  { %1037 = vsyncpa [#allocation6], 1 }

</bundles_post_ra>
